<compile_context>
chip_gen: v7x
topology: tpu7x:2x2x1
jax: 0.10.0
libtpu: 0.0.40
codegen_flags: <defaults>
</compile_context>

<pallas_src>
import functools

import jax
import jax.numpy as jnp
from jax.experimental import pallas as pl
from jax.experimental.pallas import tpu as pltpu

LANES = 128
MAX_TILE_ROWS = 1024  # (1024, 128) f32 block = 512 KiB per buffer


def _focal_loss_terms(x, t, gamma, alpha):
    """Elementwise soft-focal loss in f32. x = logits, t = soft targets."""
    # Shared exponential: e = exp(-|x|) feeds both BCE and sigmoid.
    e = jnp.exp(-jnp.abs(x))
    # Numerically-stable BCE with logits (== torch BCEWithLogitsLoss 'none').
    bce = jnp.maximum(x, 0.0) - x * t + jnp.log1p(e)
    # sigmoid(x) from the same e:  x>=0 -> 1/(1+e) ;  x<0 -> e/(1+e) = 1 - 1/(1+e)
    s = 1.0 / (1.0 + e)
    p = jnp.where(x >= 0.0, s, 1.0 - s)

    p_t = t * p + (1.0 - t) * (1.0 - p)
    alpha_factor = t * alpha + (1.0 - t) * (1.0 - alpha)

    q = jnp.maximum(1.0 - p_t, 0.0)  # clamp: avoids NaN from rounding p_t > 1
    if gamma == 1.5:
        modulating = q * jnp.sqrt(q)
    elif gamma == 2.0:
        modulating = q * q
    elif gamma == 1.0:
        modulating = q
    elif gamma == 0.0:
        modulating = jnp.ones_like(q)
    else:
        modulating = jnp.power(q, gamma)

    return bce * alpha_factor * modulating


def _soft_focal_elem_kernel(pred_ref, gt_ref, loss_ref, *, gamma, alpha):
    """'none' reduction: write the full elementwise loss tile."""
    x = pred_ref[...].astype(jnp.float32)
    t = gt_ref[...].astype(jnp.float32)
    loss_ref[...] = _focal_loss_terms(x, t, gamma, alpha).astype(loss_ref.dtype)


def _soft_focal_sum_kernel(pred_ref, gt_ref, psum_ref, *, gamma, alpha,
                           n_valid, tile_rows):
    """'mean'/'sum' reduction: write a (1, LANES) per-lane partial sum for
    this tile. Padding / out-of-bounds elements are masked via an in-kernel
    iota mask (no mask array ever touches HBM)."""
    i = pl.program_id(0)
    x = pred_ref[...].astype(jnp.float32)
    t = gt_ref[...].astype(jnp.float32)
    loss = _focal_loss_terms(x, t, gamma, alpha)

    row = jax.lax.broadcasted_iota(jnp.int32, loss.shape, 0)
    lane = jax.lax.broadcasted_iota(jnp.int32, loss.shape, 1)
    gidx = (i * tile_rows + row) * LANES + lane
    loss = jnp.where(gidx < n_valid, loss, 0.0)  # select (not mul) kills NaN pad

    psum_ref[...] = jnp.sum(loss, axis=0, keepdims=True)  # (1, LANES)


def soft_focal_loss(pred, gt, gamma=1.5, alpha=0.25, reduction="mean"):
    """Pallas-backed SoftFocalLoss forward.

    pred, gt: arrays of identical shape (e.g. NCHW logits / soft targets).
    reduction: 'mean' | 'sum' | 'none'
    """
    assert pred.shape == gt.shape
    orig_shape = pred.shape
    n_valid = pred.size
    gamma = float(gamma)
    alpha = float(alpha)

    # Flatten (free bitcast for contiguous arrays); pad only the ragged tail
    # (< 128 elements) so the flat vector reshapes to a lane-dense 2-D slab.
    flat_pred = pred.reshape(-1)
    flat_gt = gt.reshape(-1)
    pad = (-n_valid) % LANES
    if pad:
        flat_pred = jnp.pad(flat_pred, (0, pad))
        flat_gt = jnp.pad(flat_gt, (0, pad))
    rows = (n_valid + pad) // LANES
    pred2d = flat_pred.reshape(rows, LANES)
    gt2d = flat_gt.reshape(rows, LANES)

    # Big tiles; a partial last block is handled by Pallas (stores masked,
    # reads masked in-kernel via the iota mask for the sum path).
    tile_rows = min(MAX_TILE_ROWS, rows)
    num_tiles = pl.cdiv(rows, tile_rows)
    in_spec = pl.BlockSpec((tile_rows, LANES), lambda i: (i, 0))

    if reduction == "none":
        kernel = functools.partial(_soft_focal_elem_kernel,
                                   gamma=gamma, alpha=alpha)
        loss2d = pl.pallas_call(
            kernel,
            out_shape=jax.ShapeDtypeStruct((rows, LANES), jnp.float32),
            grid_spec=pltpu.PrefetchScalarGridSpec(
                num_scalar_prefetch=0,
                grid=(num_tiles,),
                in_specs=[in_spec, in_spec],
                out_specs=in_spec),
            compiler_params=pltpu.CompilerParams(
                dimension_semantics=("parallel",)),
        )(pred2d, gt2d)
        return loss2d.reshape(-1)[:n_valid].reshape(orig_shape)

    if reduction not in ("mean", "sum"):
        raise ValueError(f"bad reduction: {reduction}")

    kernel = functools.partial(_soft_focal_sum_kernel, gamma=gamma,
                               alpha=alpha, n_valid=n_valid,
                               tile_rows=tile_rows)
    psum = pl.pallas_call(
        kernel,
        out_shape=jax.ShapeDtypeStruct((num_tiles, LANES), jnp.float32),
        grid_spec=pltpu.PrefetchScalarGridSpec(
            num_scalar_prefetch=0,
            grid=(num_tiles,),
            in_specs=[in_spec, in_spec],
            out_specs=pl.BlockSpec((1, LANES), lambda i: (i, 0))),
        compiler_params=pltpu.CompilerParams(
            dimension_semantics=("parallel",)),
    )(pred2d, gt2d)

    total = jnp.sum(psum, dtype=jnp.float32)
    if reduction == "sum":
        return total
    return total / jnp.float32(n_valid)


def _reference(pred, gt, gamma=1.5, alpha=0.25, reduction="mean"):
    """Pure-JAX reference mirroring the PyTorch module."""
    x = pred.astype(jnp.float32)
    t = gt.astype(jnp.float32)
    bce = jnp.maximum(x, 0.0) - x * t + jnp.log1p(jnp.exp(-jnp.abs(x)))
    p = jax.nn.sigmoid(x)
    p_t = t * p + (1 - t) * (1 - p)
    alpha_factor = t * alpha + (1 - t) * (1 - alpha)
    modulating = jnp.power(1.0 - p_t, gamma)
    loss = bce * alpha_factor * modulating
    if reduction == "mean":
        return loss.mean()
    if reduction == "sum":
        return loss.sum()
    return loss


if __name__ == "__main__":
    key = jax.random.PRNGKey(0)

    # Case 1: lane-aligned NCHW classification map (no padding path).
    k1, k2 = jax.random.split(key)
    pred = jax.random.normal(k1, (2, 4, 16, 16), dtype=jnp.float32)   # logits
    gt = jax.random.uniform(k2, (2, 4, 16, 16), dtype=jnp.float32)    # soft labels

    out_mean = jax.block_until_ready(soft_focal_loss(pred, gt, reduction="mean"))
    out_sum = jax.block_until_ready(soft_focal_loss(pred, gt, reduction="sum"))
    out_none = jax.block_until_ready(soft_focal_loss(pred, gt, reduction="none"))

    ref_mean = _reference(pred, gt, reduction="mean")
    ref_sum = _reference(pred, gt, reduction="sum")
    ref_none = _reference(pred, gt, reduction="none")

    assert jnp.allclose(out_mean, ref_mean, rtol=1e-5, atol=1e-6), (out_mean, ref_mean)
    assert jnp.allclose(out_sum, ref_sum, rtol=1e-5, atol=1e-5), (out_sum, ref_sum)
    assert jnp.allclose(out_none, ref_none, rtol=1e-5, atol=1e-6)

    # Case 2: ragged size (945 elements) to exercise the in-kernel mask path.
    k3, k4 = jax.random.split(k1)
    pred_r = jax.random.normal(k3, (3, 5, 7, 9), dtype=jnp.float32)
    gt_r = jax.random.uniform(k4, (3, 5, 7, 9), dtype=jnp.float32)

    out_mean_r = jax.block_until_ready(soft_focal_loss(pred_r, gt_r, reduction="mean"))
    out_none_r = jax.block_until_ready(soft_focal_loss(pred_r, gt_r, reduction="none"))
    ref_mean_r = _reference(pred_r, gt_r, reduction="mean")
    ref_none_r = _reference(pred_r, gt_r, reduction="none")

    assert jnp.allclose(out_mean_r, ref_mean_r, rtol=1e-5, atol=1e-6), (out_mean_r, ref_mean_r)
    assert jnp.allclose(out_none_r, ref_none_r, rtol=1e-5, atol=1e-6)

    print("KERNEL_OK")
</pallas_src>

<mosaic_0001>
module attributes {stable_mosaic.version = 11 : i64} {
  func.func @_soft_focal_sum_kernel(%arg0: i32, %arg1: memref<16x128xf32, #tpu.memory_space<vmem>>, %arg2: memref<16x128xf32, #tpu.memory_space<vmem>>, %arg3: memref<1x128xf32, #tpu.memory_space<vmem>>) attributes {dimension_semantics = [#tpu.dimension_semantics<parallel>], iteration_bounds = array<i64: 1>, scalar_prefetch = 0 : i64, scratch_operands = 0 : i64, tpu.core_type = #tpu.core_type<tc>, window_params = [{transform_indices = @transform_0, window_bounds = array<i64: 16, 128>}, {transform_indices = @transform_1, window_bounds = array<i64: 16, 128>}, {transform_indices = @transform_2, window_bounds = array<i64: 1, 128>}]} {
    %c0 = arith.constant 0 : index
    %c0_0 = arith.constant 0 : index
    %0 = vector.load %arg1[%c0, %c0_0] : memref<16x128xf32, #tpu.memory_space<vmem>>, vector<16x128xf32>
    %c0_1 = arith.constant 0 : index
    %c0_2 = arith.constant 0 : index
    %1 = vector.load %arg2[%c0_1, %c0_2] : memref<16x128xf32, #tpu.memory_space<vmem>>, vector<16x128xf32>
    %2 = math.absf %0 : vector<16x128xf32>
    %cst = arith.constant 0.000000e+00 : f32
    %3 = vector.broadcast %cst : f32 to vector<16x128xf32>
    %4 = arith.subf %3, %2 : vector<16x128xf32>
    %5 = math.exp %4 : vector<16x128xf32>
    %cst_3 = arith.constant 0.000000e+00 : f32
    %6 = vector.broadcast %cst_3 : f32 to vector<16x128xf32>
    %7 = arith.maximumf %0, %6 : vector<16x128xf32>
    %8 = arith.mulf %0, %1 : vector<16x128xf32>
    %9 = arith.subf %7, %8 : vector<16x128xf32>
    %10 = math.log1p %5 : vector<16x128xf32>
    %11 = arith.addf %9, %10 : vector<16x128xf32>
    %cst_4 = arith.constant 1.000000e+00 : f32
    %12 = vector.broadcast %cst_4 : f32 to vector<16x128xf32>
    %13 = arith.addf %12, %5 : vector<16x128xf32>
    %cst_5 = arith.constant 1.000000e+00 : f32
    %14 = vector.broadcast %cst_5 : f32 to vector<16x128xf32>
    %15 = arith.divf %14, %13 : vector<16x128xf32>
    %cst_6 = arith.constant 0.000000e+00 : f32
    %16 = vector.broadcast %cst_6 : f32 to vector<16x128xf32>
    %17 = arith.cmpf oge, %0, %16 : vector<16x128xf32>
    %cst_7 = arith.constant 1.000000e+00 : f32
    %18 = vector.broadcast %cst_7 : f32 to vector<16x128xf32>
    %19 = arith.subf %18, %15 : vector<16x128xf32>
    %20 = arith.select %17, %15, %19 : vector<16x128xi1>, vector<16x128xf32>
    %21 = arith.mulf %1, %20 : vector<16x128xf32>
    %cst_8 = arith.constant 1.000000e+00 : f32
    %22 = vector.broadcast %cst_8 : f32 to vector<16x128xf32>
    %23 = arith.subf %22, %1 : vector<16x128xf32>
    %cst_9 = arith.constant 1.000000e+00 : f32
    %24 = vector.broadcast %cst_9 : f32 to vector<16x128xf32>
    %25 = arith.subf %24, %20 : vector<16x128xf32>
    %26 = arith.mulf %23, %25 : vector<16x128xf32>
    %27 = arith.addf %21, %26 : vector<16x128xf32>
    %cst_10 = arith.constant 2.500000e-01 : f32
    %28 = vector.broadcast %cst_10 : f32 to vector<16x128xf32>
    %29 = arith.mulf %1, %28 : vector<16x128xf32>
    %cst_11 = arith.constant 1.000000e+00 : f32
    %30 = vector.broadcast %cst_11 : f32 to vector<16x128xf32>
    %31 = arith.subf %30, %1 : vector<16x128xf32>
    %cst_12 = arith.constant 7.500000e-01 : f32
    %32 = vector.broadcast %cst_12 : f32 to vector<16x128xf32>
    %33 = arith.mulf %31, %32 : vector<16x128xf32>
    %34 = arith.addf %29, %33 : vector<16x128xf32>
    %cst_13 = arith.constant 1.000000e+00 : f32
    %35 = vector.broadcast %cst_13 : f32 to vector<16x128xf32>
    %36 = arith.subf %35, %27 : vector<16x128xf32>
    %cst_14 = arith.constant 0.000000e+00 : f32
    %37 = vector.broadcast %cst_14 : f32 to vector<16x128xf32>
    %38 = arith.maximumf %36, %37 : vector<16x128xf32>
    %39 = math.sqrt %38 : vector<16x128xf32>
    %40 = arith.mulf %38, %39 : vector<16x128xf32>
    %41 = arith.mulf %11, %34 : vector<16x128xf32>
    %42 = arith.mulf %41, %40 : vector<16x128xf32>
    %43 = tpu.iota {dimensions = array<i32: 0>} : vector<16x128xi32>
    %44 = tpu.iota {dimensions = array<i32: 1>} : vector<16x128xi32>
    %c16_i32 = arith.constant 16 : i32
    %45 = arith.muli %arg0, %c16_i32 : i32
    %46 = vector.broadcast %45 : i32 to vector<16x128xi32>
    %47 = arith.addi %46, %43 : vector<16x128xi32>
    %c128_i32 = arith.constant 128 : i32
    %48 = vector.broadcast %c128_i32 : i32 to vector<16x128xi32>
    %49 = arith.muli %47, %48 : vector<16x128xi32>
    %50 = arith.addi %49, %44 : vector<16x128xi32>
    %c2048_i32 = arith.constant 2048 : i32
    %51 = vector.broadcast %c2048_i32 : i32 to vector<16x128xi32>
    %52 = arith.cmpi slt, %50, %51 : vector<16x128xi32>
    %cst_15 = arith.constant 0.000000e+00 : f32
    %53 = vector.broadcast %cst_15 : f32 to vector<16x128xf32>
    %54 = arith.select %52, %42, %53 : vector<16x128xi1>, vector<16x128xf32>
    %cst_16 = arith.constant dense<0.000000e+00> : vector<128xf32>
    %55 = vector.multi_reduction <add>, %54, %cst_16 [0] : vector<16x128xf32> to vector<128xf32>
    %56 = vector.shape_cast %55 : vector<128xf32> to vector<1x128xf32>
    %c0_17 = arith.constant 0 : index
    %c0_18 = arith.constant 0 : index
    %57 = vector.load %arg3[%c0_17, %c0_18] : memref<1x128xf32, #tpu.memory_space<vmem>>, vector<1x128xf32>
    tpu.vector_store %arg3[%c0_17, %c0_18], %56 {strides = array<i32>} : memref<1x128xf32, #tpu.memory_space<vmem>>, vector<1x128xf32>,
    return
  }
  func.func @transform_0(%arg0: i32) -> (i32, i32) {
    %c0_i32 = arith.constant 0 : i32
    %c0_i32_0 = arith.constant 0 : i32
    return %arg0, %c0_i32 : i32, i32
  }
  func.func @transform_1(%arg0: i32) -> (i32, i32) {
    %c0_i32 = arith.constant 0 : i32
    %c0_i32_0 = arith.constant 0 : i32
    return %arg0, %c0_i32 : i32, i32
  }
  func.func @transform_2(%arg0: i32) -> (i32, i32) {
    %c0_i32 = arith.constant 0 : i32
    %c0_i32_0 = arith.constant 0 : i32
    return %arg0, %c0_i32 : i32, i32
  }
}

</mosaic_0001>

<bundles_post_ra>
// kernel: tpu_custom_call.1
= control target key start
LH: loop header
LB: loop body
LE: loop exit
PB: predicated region body
PF: predicated region fallthrough
CT: control target
= control target key end

     0   :  { %7 = vsyncpa [#allocation3], 0  ;;  %s338_s0 = inlined_call_operand.hbm [shape: f32[16,128], index: 0, kind: input, shape index: {}]   ;;  %s339_s1 = inlined_call_operand.hbm [shape: f32[16,128], index: 1, kind: input, shape index: {}]   ;;  %s340_s2 = inlined_call_operand.hbm [shape: f32[1,128], index: 2, kind: output, shape index: {}]  }
   0x1   :  { %8 = vsyncpa [#allocation6], 0 }
   0x2   :  { %9 = vsyncpa [#allocation4], 0  ;;  %s264_s9 = smov [#allocation2]   ;;  %s192_s13 = scalar_lea.hbm %s338_s0, 256 }
   0x3   :  { %s15_s10 = sshll.u32 %s264_s9, 4  ;;  %p193_p0 = scmp.ne.s32.totalorder %s338_s0, %s192_s13  ;;  %s16_s10 = int_to_ptr.vmem [resolvable:$true] %s15_s10 }
   0x4   :  { %p196_p1 = scmp.lt.u32.totalorder %s192_s13, %s338_s0 }
   0x6   :  { %p198_p2 = pnand %p196_p1, %p193_p0 }
   0x8   :  { %201 = shalt.err (!%p198_p2)
}
   0x9   :  { %s202_s18 = scalar_lea.vmem %s16_s10, 256  ;;  %p207_p4 = scmp.lt.s32.totalorder %s16_s10, %s16_s10 }
   0xa   :  { %p203_p3 = scmp.ne.s32.totalorder %s16_s10, %s202_s18  ;;  %p208_p5 = scmp.lt.s32.totalorder %s202_s18, %s202_s18 }
   0xc   :  { %p209_p6 = por %p208_p5, %p207_p4 }
   0xe   :  { %p210_p7 = pnand %p209_p6, %p203_p3 }
  0x10   :  { %213 = shalt.err (!%p210_p7)
}
  0x11   :  { %s265_s19 = smov 128   ;;  %s266_s20 = smov 8  }
  0x12   :  { %21 = dma.hbm_to_vmem [thread:$0]  %s338_s0, 256, %s16_s10, [#allocation3], %s265_s19, %s265_s19, %s266_s20  }
  0x13   :  { %s267_s23 = smov [#allocation5]   ;;  %s214_s27 = scalar_lea.hbm %s339_s1, 256 }
  0x14   :  { %s27_s24 = sshll.u32 %s267_s23, 4  ;;  %p215_p8 = scmp.ne.s32.totalorder %s339_s1, %s214_s27  ;;  %s28_s24 = int_to_ptr.vmem [resolvable:$true] %s27_s24 }
  0x15   :  { %p218_p9 = scmp.lt.u32.totalorder %s214_s27, %s339_s1 }
  0x17   :  { %p220_p10 = pnand %p218_p9, %p215_p8 }
  0x19   :  { %223 = shalt.err (!%p220_p10)
}
  0x1a   :  { %s224_s4 = scalar_lea.vmem %s28_s24, 256  ;;  %p229_p12 = scmp.lt.s32.totalorder %s28_s24, %s28_s24 }
  0x1b   :  { %p225_p11 = scmp.ne.s32.totalorder %s28_s24, %s224_s4  ;;  %p230_p13 = scmp.lt.s32.totalorder %s224_s4, %s224_s4 }
  0x1d   :  { %p231_p0 = por %p230_p13, %p229_p12 }
  0x1f   :  { %p232_p1 = pnand %p231_p0, %p225_p11 }
  0x21   :  { %235 = shalt.err (!%p232_p1)
}
  0x22   :  { %33 = dma.hbm_to_vmem [thread:$0]  %s339_s1, 256, %s28_s24, [#allocation6], %s265_s19, %s265_s19, %s266_s20  }
  0x23   :  { %258 = dma.done.wait [#allocation3], 256  }
  0x24   :  { %259 = vsyncadd [#allocation3], 4294967040 }
  0x25   :  { %260 = dma.done.wait [#allocation6], 256  }
  0x26   :  { %261 = vsyncadd [#allocation6], 4294967040  ;;  %v308_v0 = vld [vmem:[#allocation2] sm:$0xff]  ;;  %v310_v1 = vld [vmem:[#allocation2 + $0x8] sm:$0xff]  ;;  %v130_v34 = vlaneseq  ;;  %s268_s1 = smov [#allocation7]  }
  0x27   :  { %v44_v2 = vand.u32 2147483647, %v308_v0  ;;  %v45_v3 = vand.u32 2147483647, %v310_v1  ;;  %v42_v12 = vld [vmem:[#allocation5] sm:$0xff]  ;;  %v43_v14 = vld [vmem:[#allocation5 + $0x8] sm:$0xff] }
  0x28   :  { %vm84_vm0 = vcmp.ge.f32.partialorder %v308_v0, 0.0  ;;  %vm85_vm1 = vcmp.ge.f32.partialorder %v310_v1, 0.0  ;;  %v92_v18 = vsub.f32 1.0, %v42_v12  ;;  %v93_v20 = vsub.f32 1.0, %v43_v14  ;;  %s161_s6 = sshll.u32 %s268_s1, 4  ;;  %s162_s6 = int_to_ptr.vmem [resolvable:$true] %s161_s6 }
  0x29   :  { %v46_v4 = vsub.f32 0.0, %v44_v2  ;;  %v47_v5 = vsub.f32 0.0, %v45_v3  ;;  %v52_v43 = vmax.f32 %v308_v0, 0.0  ;;  %v54_v44 = vmul.f32 %v42_v12, %v308_v0  ;;  %s236_s7 = scalar_lea.vmem %s162_s6, 16  ;;  %s240_s8 = scalar_lea.vmem %s162_s6, 32 }
  0x2a   :  { %v131_v45 = vshrl.u32 %v130_v34, 7  ;;  %v53_v46 = vmax.f32 %v310_v1, 0.0  ;;  %v55_v47 = vmul.f32 %v43_v14, %v310_v1  ;;  %v100_v54 = vmul.f32 0.25, %v42_v12  ;;  %p237_p2 = scmp.ne.s32.totalorder %s162_s6, %s236_s7  ;;  %p241_p3 = scmp.lt.s32.totalorder %s162_s6, %s162_s6 }
  0x2b   :  { %v48_v6 = vmul.f32 1.442695, %v46_v4  ;;  %v50_v7 = vmul.f32 1.442695, %v47_v5  ;;  %v56_v53 = vsub.f32 %v52_v43, %v54_v44  ;;  %v102_v55 = vmul.f32 0.75, %v92_v18  ;;  %p242_p4 = scmp.lt.s32.totalorder %s240_s8, %s236_s7 }
  0x2c   :  { %v132_v56 = vadd.s32 8, %v131_v45  ;;  %v57_v57 = vsub.f32 %v53_v46, %v55_v47  ;;  %v101_v59 = vmul.f32 0.25, %v43_v14  ;;  %v103_v60 = vmul.f32 0.75, %v93_v20 }
  0x2d   :  { %176 = vpow2.f32 %v48_v6  ;;  %v134_v62 = vand.u32 127, %v130_v34  ;;  %v139_v63 = vmul.u32 128, %v131_v45  ;;  %v104_v1 = vadd.f32 %v102_v55, %v100_v54  ;;  %p243_p5 = por %p242_p4, %p241_p3 }
  0x2e   :  { %178 = vpow2.f32 %v50_v7  ;;  %v140_v2 = vmul.u32 128, %v132_v56  ;;  %v105_v5 = vadd.f32 %v103_v60, %v101_v59 }
  0x2f   :  { %p244_p6 = pnand %p243_p5, %p237_p2 }
  0x37   :  { %v177_v8 = vpop.eup %176 }
  0x38   :  { %v179_v9 = vpop.eup %178  ;;  %v58_v10 = vadd.f32 1.0, %v177_v8  ;;  %v61_v28 = vmul.f32 -0.5, %v177_v8  ;;  %v64_v38 = vand.u32 2147483647, %v177_v8 }
  0x39   :  { %v67_v11 = vadd.f32 1.0, %v179_v9  ;;  %v70_v30 = vmul.f32 -0.5, %v179_v9  ;;  %v73_v42 = vand.u32 2147483647, %v179_v9 }
  0x3a   :  { %180 = vrcp.f32 %v58_v10  ;;  %v62_v35 = vadd.f32 1.0, %v61_v28  ;;  %vm65_vm2 = vcmp.lt.f32.partialorder %v64_v38, 0.0004427343 }
  0x3b   :  { %182 = vrcp.f32 %v67_v11  ;;  %v71_v39 = vadd.f32 1.0, %v70_v30  ;;  %vm320_vm3 = vcmp.lt.f32.partialorder %v73_v42, 0.0004427343 }
  0x3c   :  { %184 = vlog2.f32 %v58_v10  ;;  %v63_v49 = vmul.f32 %v177_v8, %v62_v35 }
  0x3d   :  { %186 = vlog2.f32 %v67_v11  ;;  %v72_v51 = vmul.f32 %v179_v9, %v71_v39  ;;  %v141_v11 = vadd.s32 %v139_v63, %v134_v62 }
  0x3f   :  { %vm143_vm8 = vcmp.lt.s32.totalorder %v141_v11, 2048 }
  0x44   :  { %v181_v13 = vpop.eup %180 }
  0x45   :  { %v183_v15 = vpop.eup %182  ;;  %v86_v16 = vsub.f32 1.0, %v181_v13 }
  0x46   :  { %v87_v17 = vsub.f32 1.0, %v183_v15  ;;  %v185_v37 = vpop.eup %184 }
  0x47   :  { %v88_v19 = vsel %vm84_vm0, %v181_v13, %v86_v16  ;;  %v187_v41 = vpop.eup %186  ;;  %v60_v48 = vmul.f32 0.6931472, %v185_v37 }
  0x48   :  { %v89_v21 = vsel %vm85_vm1, %v183_v15, %v87_v17  ;;  %v90_v22 = vmul.f32 %v88_v19, %v42_v12  ;;  %v94_v23 = vsub.f32 1.0, %v88_v19  ;;  %v69_v50 = vmul.f32 0.6931472, %v187_v41 }
  0x49   :  { %v91_v24 = vmul.f32 %v89_v21, %v43_v14  ;;  %v95_v25 = vsub.f32 1.0, %v89_v21  ;;  %v66_v58 = vsel %vm65_vm2, %v63_v49, %v60_v48  ;;  %v142_v14 = vadd.s32 %v140_v2, %v134_v62 }
  0x4a   :  { %v96_v26 = vmul.f32 %v94_v23, %v92_v18  ;;  %v75_v61 = vsel %vm320_vm3, %v72_v51, %v69_v50  ;;  %v76_v0 = vadd.f32 %v66_v58, %v56_v53 }
  0x4b   :  { %v97_v27 = vmul.f32 %v95_v25, %v93_v20  ;;  %v77_v4 = vadd.f32 %v75_v61, %v57_v57  ;;  %vm144_vm9 = vcmp.lt.s32.totalorder %v142_v14, 2048 }
  0x4c   :  { %v98_v29 = vadd.f32 %v96_v26, %v90_v22  ;;  %v126_v13 = vmul.f32 %v104_v1, %v76_v0 }
  0x4d   :  { %v99_v31 = vadd.f32 %v97_v27, %v91_v24  ;;  %v127_v17 = vmul.f32 %v105_v5, %v77_v4 }
  0x4e   :  { %v106_v32 = vsub.f32 1.0, %v98_v29 }
  0x4f   :  { %v107_v33 = vsub.f32 1.0, %v99_v31 }
  0x50   :  { %v108_v36 = vmax.f32 %v106_v32, 0.0 }
  0x51   :  { %v109_v40 = vmax.f32 %v107_v33, 0.0 }
  0x52   :  { %188 = vrsqrt.f32 %v108_v36  ;;  %vm112_vm4 = vcmp.eq.f32.partialorder %v108_v36, inf  ;;  %v115_v6 = vand.u32 2147483648, %v108_v36  ;;  %vm114_vm5 = vcmp.eq.f32.partialorder %v108_v36, 0.0 }
  0x53   :  { %190 = vrsqrt.f32 %v109_v40  ;;  %vm119_vm6 = vcmp.eq.f32.partialorder %v109_v40, inf  ;;  %v122_v9 = vand.u32 2147483648, %v109_v40  ;;  %vm121_vm7 = vcmp.eq.f32.partialorder %v109_v40, 0.0 }
  0x5c   :  { %v189_v3 = vpop.eup %188 }
  0x5d   :  { %v191_v7 = vpop.eup %190  ;;  %v111_v8 = vmul.f32 %v189_v3, %v108_v36 }
  0x5e   :  { %v118_v10 = vmul.f32 %v191_v7, %v109_v40 }
  0x5f   :  { %v113_v12 = vsel %vm112_vm4, %v108_v36, %v111_v8 }
  0x60   :  { %v116_v15 = vsel %vm114_vm5, %v115_v6, %v113_v12  ;;  %v120_v16 = vsel %vm119_vm6, %v109_v40, %v118_v10 }
  0x61   :  { %v123_v18 = vsel %vm121_vm7, %v122_v9, %v120_v16  ;;  %v124_v19 = vmul.f32 %v116_v15, %v108_v36 }
  0x62   :  { %v125_v20 = vmul.f32 %v123_v18, %v109_v40 }
  0x63   :  { %v128_v21 = vmul.f32 %v126_v13, %v124_v19 }
  0x64   :  { %v129_v22 = vmul.f32 %v127_v17, %v125_v20 }
  0x65   :  { %v145_v23 = vsel %vm143_vm8, %v128_v21, 0.0 }
  0x66   :  { %v146_v24 = vsel %vm144_vm9, %v129_v22, 0.0 }
  0x67   :  { %v147_v25 = vadd.f32 %v146_v24, %v145_v23 }
  0x69   :  { %v148_v26 = vrot.slane %v147_v25, 4 }
  0x6b   :  { %v149_v27 = vadd.f32 %v148_v26, %v147_v25 }
  0x6d   :  { %v150_v28 = vrot.slane %v149_v27, 2 }
  0x6f   :  { %v151_v29 = vadd.f32 %v150_v28, %v149_v27 }
  0x71   :  { %v152_v30 = vrot.slane %v151_v29, 1 }
  0x73   :  { %v153_v31 = vadd.f32 %v152_v30, %v151_v29 }
  0x75   :  { %154 = vst [vmem:[#allocation7] sm:$0x1] %v153_v31 }
  0x76   :  { %247 = shalt.err (!%p244_p6)
}
  0x77   :  { %s248_s11 = scalar_lea.hbm %s340_s2, 16 }
  0x78   :  { %p249_p7 = scmp.ne.s32.totalorder %s340_s2, %s248_s11  ;;  %p252_p8 = scmp.lt.u32.totalorder %s248_s11, %s340_s2 }
  0x7a   :  { %p254_p9 = pnand %p252_p8, %p249_p7 }
  0x7c   :  { %257 = shalt.err (!%p254_p9)
}
  0x7d   :  { %164 = dma.vmem_to_hbm [thread:$0]  %s162_s6, 16, %s340_s2, [#allocation4]  }
  0x7e   :  { %262 = dma.done.wait [#allocation4], 16  }
  0x7f   :  { %263 = vsyncadd [#allocation4], 4294967280 }
  0x80   :  { %168 = vsyncpa [#allocation3], 1 }
  0x81   :  { %169 = vsyncpa [#allocation6], 1 }
  0x82   :  { %170 = vsyncpa [#allocation4], 1 }

</bundles_post_ra>
